<compile_context>
chip_gen: v6e
topology: v6e:2x2x1
jax: 0.10.0
libtpu: 0.0.40
codegen_flags: <defaults>
</compile_context>

<pallas_src>
import functools

import jax
import jax.numpy as jnp
from jax.experimental import pallas as pl
from jax.experimental.pallas import tpu as pltpu

IN_FEATURES = 28 * 28      # 784 (multiple of 8 -> no K padding needed)
HIDDEN = 128
OUT_FEATURES = 10
OUT_PAD = 128              # lane-dense fc2 / output width
NEG_BIG = -1e30            # padded-logit bias: exp(NEG_BIG - m) == 0 in the LSE


def mlp_kernel(x_ref, w1_ref, b1_ref, w2_ref, b2_ref, o_ref):
    # x_ref : (TB, 784) f32     w1_ref: (784, 128) bf16   b1_ref: (1, 128) f32
    # w2_ref: (128, 128) bf16   b2_ref: (1, 128)  f32     o_ref : (TB, 128) f32
    x = x_ref[...].astype(jnp.bfloat16)          # VPU cast; x streamed as raw f32
    h = jnp.dot(x, w1_ref[...], preferred_element_type=jnp.float32)
    h = jnp.maximum(h + b1_ref[...], 0.0)

    logits = jnp.dot(h.astype(w2_ref.dtype), w2_ref[...],
                     preferred_element_type=jnp.float32) + b2_ref[...]

    # log_softmax over the padded 128 lanes; padded lanes carry -1e30 bias so
    # they vanish from the LSE.  max/sum -> XLU, exp/log -> EUP (overlap MXU).
    m = jnp.max(logits, axis=-1, keepdims=True)
    shifted = logits - m
    lse = jnp.log(jnp.sum(jnp.exp(shifted), axis=-1, keepdims=True))
    o_ref[...] = shifted - lse


def _round_up(n, m):
    return ((n + m - 1) // m) * m


@functools.partial(jax.jit, static_argnames=("block_b",))
def net_forward(x_nchw, w1, b1, w2, b2, *, block_b=2048):
    """x_nchw: (B, 1, 28, 28) float32.
    Params stored transposed vs. torch: w1 (784,128), b1 (128,), w2 (128,10),
    b2 (10,).  Returns (B, 10) float32 log-probabilities."""
    B = x_nchw.shape[0]
    block_b = max(16, _round_up(block_b, 16))

    # Tile rows: multiple of 16, capped at block_b, and sized so the grid has at
    # least 2 steps whenever B allows it (keeps both v7x TensorCores busy) while
    # keeping the partial-final-tile waste small.
    n_steps = max(2, pl.cdiv(B, block_b))
    tb = min(block_b, _round_up(pl.cdiv(B, n_steps), 16))
    grid = (pl.cdiv(B, tb),)        # last tile may be partial; OOB rows masked

    # Glue: torch's x.view(B, -1) — a free reshape, no pad/cast pre-pass in HBM.
    x2d = x_nchw.reshape(B, IN_FEATURES)

    # Weight prep (tiny, one-time): bf16 weights; fc2 padded to 128 output lanes
    # with NEG_BIG bias on the padded lanes so they never pollute the softmax.
    w1p = w1.astype(jnp.bfloat16)
    b1p = b1.reshape(1, HIDDEN).astype(jnp.float32)
    w2p = jnp.pad(w2, ((0, 0), (0, OUT_PAD - OUT_FEATURES))).astype(jnp.bfloat16)
    b2p = jnp.pad(b2.reshape(1, OUT_FEATURES),
                  ((0, 0), (0, OUT_PAD - OUT_FEATURES)),
                  constant_values=NEG_BIG).astype(jnp.float32)

    # Scoped-VMEM budget: double-buffered x/out blocks + in-kernel temporaries
    # (bf16 x copy, h, logits, softmax) + weights + slack.  Raised above v5e's
    # 16 MiB default; well under physical VMEM on v5e/v6e (128 MiB) and v7x (64).
    vmem_est = int(2 * tb * IN_FEATURES * 4      # x double-buffer (f32)
                   + 2 * tb * OUT_PAD * 4        # out double-buffer (f32)
                   + tb * IN_FEATURES * 2        # bf16 cast of the x tile
                   + 8 * tb * OUT_PAD * 4        # h / logits / softmax temps
                   + (4 << 20))                  # weights + slack
    vmem_limit = min(max(vmem_est, 32 << 20), 48 << 20)

    out = pl.pallas_call(
        mlp_kernel,
        out_shape=jax.ShapeDtypeStruct((B, OUT_PAD), jnp.float32),
        grid_spec=pltpu.PrefetchScalarGridSpec(
            num_scalar_prefetch=0,
            grid=grid,
            in_specs=[
                pl.BlockSpec((tb, IN_FEATURES), lambda i: (i, 0)),    # x: streamed
                pl.BlockSpec((IN_FEATURES, HIDDEN), lambda i: (0, 0)),  # w1 resident
                pl.BlockSpec((1, HIDDEN), lambda i: (0, 0)),            # b1 resident
                pl.BlockSpec((HIDDEN, OUT_PAD), lambda i: (0, 0)),      # w2 resident
                pl.BlockSpec((1, OUT_PAD), lambda i: (0, 0)),           # b2 resident
            ],
            out_specs=pl.BlockSpec((tb, OUT_PAD), lambda i: (i, 0)),
        ),
        compiler_params=pltpu.CompilerParams(
            dimension_semantics=("parallel",),
            vmem_limit_bytes=vmem_limit,
        ),
    )(x2d, w1p, b1p, w2p, b2p)

    # Cheap column slice down to the 10 real classes (rows already exact).
    return out[:, :OUT_FEATURES]


def init_params(key):
    """Deterministic init mirroring nn.Linear defaults (uniform +-1/sqrt(fan_in)).
    Weights stored as (in_features, out_features) = torch_weight.T."""
    k1, k2, k3, k4 = jax.random.split(key, 4)
    bound1 = 1.0 / (IN_FEATURES ** 0.5)
    bound2 = 1.0 / (HIDDEN ** 0.5)
    w1 = jax.random.uniform(k1, (IN_FEATURES, HIDDEN), jnp.float32, -bound1, bound1)
    b1 = jax.random.uniform(k2, (HIDDEN,), jnp.float32, -bound1, bound1)
    w2 = jax.random.uniform(k3, (HIDDEN, OUT_FEATURES), jnp.float32, -bound2, bound2)
    b2 = jax.random.uniform(k4, (OUT_FEATURES,), jnp.float32, -bound2, bound2)
    return w1, b1, w2, b2


def net_forward_ref(x_nchw, w1, b1, w2, b2):
    """Pure-JAX reference mirroring the kernel's bf16-input / f32-accumulate math."""
    x = x_nchw.reshape(x_nchw.shape[0], -1).astype(jnp.bfloat16)
    h = jnp.maximum(
        jnp.dot(x, w1.astype(jnp.bfloat16), preferred_element_type=jnp.float32)
        + b1, 0.0)
    logits = jnp.dot(h.astype(jnp.bfloat16), w2.astype(jnp.bfloat16),
                     preferred_element_type=jnp.float32) + b2
    return jax.nn.log_softmax(logits, axis=1)


if __name__ == "__main__":
    key = jax.random.PRNGKey(0)
    kx, kp = jax.random.split(key)

    B = 2
    x = jax.random.normal(kx, (B, 1, 28, 28), dtype=jnp.float32)  # NCHW like torch
    w1, b1, w2, b2 = init_params(kp)

    out = net_forward(x, w1, b1, w2, b2)
    out = jax.block_until_ready(out)

    ref = net_forward_ref(x, w1, b1, w2, b2)
    assert out.shape == (B, OUT_FEATURES)
    assert bool(jnp.all(jnp.isfinite(out))), "non-finite outputs"
    assert jnp.allclose(out, ref, atol=2e-3, rtol=2e-3), "mismatch vs JAX reference"

    print("KERNEL_OK")
</pallas_src>

<mosaic_0001>
module attributes {stable_mosaic.version = 11 : i64} {
  func.func @mlp_kernel(%arg0: i32, %arg1: memref<16x784xf32, #tpu.memory_space<vmem>>, %arg2: memref<784x128xbf16, #tpu.memory_space<vmem>>, %arg3: memref<1x128xf32, #tpu.memory_space<vmem>>, %arg4: memref<128x128xbf16, #tpu.memory_space<vmem>>, %arg5: memref<1x128xf32, #tpu.memory_space<vmem>>, %arg6: memref<16x128xf32, #tpu.memory_space<vmem>>) attributes {dimension_semantics = [#tpu.dimension_semantics<parallel>], iteration_bounds = array<i64: 1>, scalar_prefetch = 0 : i64, scratch_operands = 0 : i64, tpu.core_type = #tpu.core_type<tc>, window_params = [{transform_indices = @transform_0, window_bounds = array<i64: 16, 784>}, {pipeline_mode = #tpu.pipeline_mode<synchronous>, transform_indices = @transform_1, window_bounds = array<i64: 784, 128>}, {pipeline_mode = #tpu.pipeline_mode<synchronous>, transform_indices = @transform_2, window_bounds = array<i64: 1, 128>}, {pipeline_mode = #tpu.pipeline_mode<synchronous>, transform_indices = @transform_3, window_bounds = array<i64: 128, 128>}, {pipeline_mode = #tpu.pipeline_mode<synchronous>, transform_indices = @transform_4, window_bounds = array<i64: 1, 128>}, {transform_indices = @transform_5, window_bounds = array<i64: 16, 128>}]} {
    %c0 = arith.constant 0 : index
    %c0_0 = arith.constant 0 : index
    %0 = vector.load %arg1[%c0, %c0_0] : memref<16x784xf32, #tpu.memory_space<vmem>>, vector<16x784xf32>
    %1 = arith.truncf %0 : vector<16x784xf32> to vector<16x784xbf16>
    %c0_1 = arith.constant 0 : index
    %c0_2 = arith.constant 0 : index
    %2 = vector.load %arg2[%c0_1, %c0_2] : memref<784x128xbf16, #tpu.memory_space<vmem>>, vector<784x128xbf16>
    %cst = arith.constant dense<0.000000e+00> : vector<16x128xf32>
    %3 = tpu.matmul %1, %2, %cst {dimension_numbers = #tpu.dot_dimension_numbers<[1], [0], [0], [1], [0, 0, 1, 1], [], []>} : vector<16x784xbf16>, vector<784x128xbf16>, vector<16x128xf32> -> vector<16x128xf32>
    %c0_3 = arith.constant 0 : index
    %c0_4 = arith.constant 0 : index
    %4 = vector.load %arg3[%c0_3, %c0_4] : memref<1x128xf32, #tpu.memory_space<vmem>>, vector<1x128xf32>
    %5 = vector.broadcast %4 : vector<1x128xf32> to vector<16x128xf32>
    %6 = arith.addf %3, %5 : vector<16x128xf32>
    %cst_5 = arith.constant 0.000000e+00 : f32
    %7 = vector.broadcast %cst_5 : f32 to vector<16x128xf32>
    %8 = arith.maximumf %6, %7 : vector<16x128xf32>
    %9 = arith.truncf %8 : vector<16x128xf32> to vector<16x128xbf16>
    %c0_6 = arith.constant 0 : index
    %c0_7 = arith.constant 0 : index
    %10 = vector.load %arg4[%c0_6, %c0_7] : memref<128x128xbf16, #tpu.memory_space<vmem>>, vector<128x128xbf16>
    %cst_8 = arith.constant dense<0.000000e+00> : vector<16x128xf32>
    %11 = tpu.matmul %9, %10, %cst_8 {dimension_numbers = #tpu.dot_dimension_numbers<[1], [0], [0], [1], [0, 0, 1, 1], [], []>} : vector<16x128xbf16>, vector<128x128xbf16>, vector<16x128xf32> -> vector<16x128xf32>
    %c0_9 = arith.constant 0 : index
    %c0_10 = arith.constant 0 : index
    %12 = vector.load %arg5[%c0_9, %c0_10] : memref<1x128xf32, #tpu.memory_space<vmem>>, vector<1x128xf32>
    %13 = vector.broadcast %12 : vector<1x128xf32> to vector<16x128xf32>
    %14 = arith.addf %11, %13 : vector<16x128xf32>
    %cst_11 = arith.constant dense<0xFF800000> : vector<16xf32>
    %15 = vector.multi_reduction <maximumf>, %14, %cst_11 [1] : vector<16x128xf32> to vector<16xf32>
    %16 = vector.shape_cast %15 : vector<16xf32> to vector<16x1xf32>
    %17 = vector.broadcast %16 : vector<16x1xf32> to vector<16x128xf32>
    %18 = arith.subf %14, %17 : vector<16x128xf32>
    %19 = math.exp %18 : vector<16x128xf32>
    %cst_12 = arith.constant dense<0.000000e+00> : vector<16xf32>
    %20 = vector.multi_reduction <add>, %19, %cst_12 [1] : vector<16x128xf32> to vector<16xf32>
    %21 = vector.shape_cast %20 : vector<16xf32> to vector<16x1xf32>
    %22 = math.log %21 : vector<16x1xf32>
    %23 = vector.broadcast %22 : vector<16x1xf32> to vector<16x128xf32>
    %24 = arith.subf %18, %23 : vector<16x128xf32>
    %c0_13 = arith.constant 0 : index
    %c0_14 = arith.constant 0 : index
    %25 = vector.load %arg6[%c0_13, %c0_14] : memref<16x128xf32, #tpu.memory_space<vmem>>, vector<16x128xf32>
    tpu.vector_store %arg6[%c0_13, %c0_14], %24 {strides = array<i32>} : memref<16x128xf32, #tpu.memory_space<vmem>>, vector<16x128xf32>,
    return
  }
  func.func @transform_0(%arg0: i32) -> (i32, i32) {
    %c0_i32 = arith.constant 0 : i32
    %c0_i32_0 = arith.constant 0 : i32
    return %arg0, %c0_i32 : i32, i32
  }
  func.func @transform_1(%arg0: i32) -> (i32, i32) {
    %c0_i32 = arith.constant 0 : i32
    %c0_i32_0 = arith.constant 0 : i32
    %c0_i32_1 = arith.constant 0 : i32
    return %c0_i32, %c0_i32_0 : i32, i32
  }
  func.func @transform_2(%arg0: i32) -> (i32, i32) {
    %c0_i32 = arith.constant 0 : i32
    %c0_i32_0 = arith.constant 0 : i32
    %c0_i32_1 = arith.constant 0 : i32
    return %c0_i32, %c0_i32_0 : i32, i32
  }
  func.func @transform_3(%arg0: i32) -> (i32, i32) {
    %c0_i32 = arith.constant 0 : i32
    %c0_i32_0 = arith.constant 0 : i32
    %c0_i32_1 = arith.constant 0 : i32
    return %c0_i32, %c0_i32_0 : i32, i32
  }
  func.func @transform_4(%arg0: i32) -> (i32, i32) {
    %c0_i32 = arith.constant 0 : i32
    %c0_i32_0 = arith.constant 0 : i32
    %c0_i32_1 = arith.constant 0 : i32
    return %c0_i32, %c0_i32_0 : i32, i32
  }
  func.func @transform_5(%arg0: i32) -> (i32, i32) {
    %c0_i32 = arith.constant 0 : i32
    %c0_i32_0 = arith.constant 0 : i32
    return %arg0, %c0_i32 : i32, i32
  }
}

</mosaic_0001>

<bundles_post_ra>
// kernel: net_forward.1
= control target key start
LH: loop header
LB: loop body
LE: loop exit
PB: predicated region body
PF: predicated region fallthrough
CT: control target
= control target key end

     0   :  { %10 = vsyncpa [#allocation3], 0  ;;  %v61_v28 = vlaneseq  ;;  %v1217_v32 = vmov 1983009808   ;;  %v1218_v53 = vmov 0.0   ;;  %vm1219_vm0 = vmmov 0   ;;  %s1513_s0 = inlined_call_operand.vmem [shape: f32[2,784], index: 0, kind: input, shape index: {}]   ;;  %s1514_s1 = inlined_call_operand.vmem [shape: bf16[784,128], index: 1, kind: input, shape index: {}]   ;;  %s1515_s2 = inlined_call_operand.vmem [shape: f32[1,128], index: 2, kind: input, shape index: {}]   ;;  %s1516_s3 = inlined_call_operand.vmem [shape: bf16[128,128], index: 3, kind: input, shape index: {}]   ;;  %s1517_s4 = inlined_call_operand.vmem [shape: f32[1,128], index: 4, kind: input, shape index: {}]   ;;  %s1518_s5 = inlined_call_operand.hbm [shape: f32[2,128], index: 5, kind: output, shape index: {}]  }
   0x1   :  { %v1106_v0 = vld [vmem:[%s1514_s1 + $0x78] sm:$0xff]   ;;  %v1110_v4 = vld [vmem:[%s1514_s1 + $0x70] sm:$0xff]   ;;  %v1114_v8 = vld [vmem:[%s1514_s1 + $0x68] sm:$0xff]   ;;  %v59_v33 = vunpack.c.l.s4 %v1217_v32  ;;  %vm616_vm1 = vcmask 130048  }
   0x2   :  { %v1107_v1 = vld [vmem:[%s1514_s1 + $0x38] sm:$0xff]   ;;  %997 = vmatprep.subr.bf16.mxu0 %v1106_v0  ;;  %v1111_v5 = vld [vmem:[%s1514_s1 + $0x30] sm:$0xff]   ;;  %v1115_v9 = vld [vmem:[%s1514_s1 + $0x28] sm:$0xff]   ;;  %v62_v34 = vshrl.u32 %v61_v28, 7 }
   0x3   :  { %v1108_v2 = vld [vmem:[%s1514_s1 + $0xf8] sm:$0xff]   ;;  %998 = vmatpush3.bf16.msra.mxu0 %v1107_v1  ;;  %v1112_v6 = vld [vmem:[%s1514_s1 + $0xf0] sm:$0xff]   ;;  %v1116_v10 = vld [vmem:[%s1514_s1 + $0xe8] sm:$0xff]   ;;  %v60_v37 = vunpack.c.0.s8 %v59_v33 }
   0x4   :  { %v1109_v3 = vld [vmem:[%s1514_s1 + $0xb8] sm:$0xff]   ;;  %1019 = vmatprep.subr.bf16.mxu1 %v1108_v2  ;;  %999 = vmatprep.subr.bf16.mxu0 %v1110_v4  ;;  %v1113_v7 = vld [vmem:[%s1514_s1 + $0xb0] sm:$0xff]   ;;  %v1117_v11 = vld [vmem:[%s1514_s1 + $0xa8] sm:$0xff]  }
   0x5   :  { %1020 = vmatpush3.bf16.msra.mxu1 %v1109_v3  ;;  %v1118_v12 = vld [vmem:[%s1514_s1 + $0x60] sm:$0xff]   ;;  %v1122_v16 = vld [vmem:[%s1514_s1 + $0x58] sm:$0xff]   ;;  %v1126_v20 = vld [vmem:[%s1514_s1 + $0x50] sm:$0xff]   ;;  %v1358_v40 = vsub.s32 %v60_v37, %v62_v34 }
   0x6   :  { %1021 = vmatprep.subr.bf16.mxu1 %v1112_v6  ;;  %v1119_v13 = vld [vmem:[%s1514_s1 + $0x20] sm:$0xff]   ;;  %v1123_v17 = vld [vmem:[%s1514_s1 + $0x18] sm:$0xff]   ;;  %v1127_v21 = vld [vmem:[%s1514_s1 + $0x10] sm:$0xff]  }
   0x7   :  { %1000 = vmatpush3.bf16.msra.mxu0 %v1111_v5  ;;  %v1120_v14 = vld [vmem:[%s1514_s1 + $0xe0] sm:$0xff]   ;;  %v1124_v18 = vld [vmem:[%s1514_s1 + $0xd8] sm:$0xff]   ;;  %v1128_v22 = vld [vmem:[%s1514_s1 + $0xd0] sm:$0xff]  }
   0x8   :  { %1001 = vmatprep.subr.bf16.mxu0 %v1114_v8  ;;  %v1121_v15 = vld [vmem:[%s1514_s1 + $0xa0] sm:$0xff]   ;;  %v1125_v19 = vld [vmem:[%s1514_s1 + $0x98] sm:$0xff]   ;;  %v1129_v23 = vld [vmem:[%s1514_s1 + $0x90] sm:$0xff]  }
   0x9   :  { %1022 = vmatpush3.bf16.msra.mxu1 %v1113_v7  ;;  %v1130_v24 = vld [vmem:[%s1514_s1 + $0x48] sm:$0xff]   ;;  %v1134_v29 = vld [vmem:[%s1514_s1 + $0x40] sm:$0xff]   ;;  %v1146_v42 = vld [vmem:[%s1514_s1 + $0x178] sm:$0xff]  }
   0xa   :  { %1023 = vmatprep.subr.bf16.mxu1 %v1116_v10  ;;  %v1131_v25 = vld [vmem:[%s1514_s1 + $0x8] sm:$0xff]   ;;  %v1135_v30 = vld [vmem:[%s1514_s1] sm:$0xff]   ;;  %v1151_v0 = vld [vmem:[%s1514_s1 + $0x138] sm:$0xff]  }
   0xb   :  { %1002 = vmatpush3.bf16.msra.mxu0 %v1115_v9  ;;  %v1132_v26 = vld [vmem:[%s1514_s1 + $0xc8] sm:$0xff]   ;;  %v1136_v31 = vld [vmem:[%s1514_s1 + $0xc0] sm:$0xff]   ;;  %v1152_v3 = vld [vmem:[%s1514_s1 + $0x170] sm:$0xff]  }
   0xc   :  { %1003 = vmatprep.subr.bf16.mxu0 %v1118_v12  ;;  %v1133_v27 = vld [vmem:[%s1514_s1 + $0x88] sm:$0xff]   ;;  %v1143_v39 = vld [vmem:[%s1513_s0 + $0x54] ss:$14 sps:$4 sm:$0xff]  }
   0xd   :  { %1024 = vmatpush3.bf16.msra.mxu1 %v1117_v11  ;;  %v1137_v35 = vld [vmem:[%s1513_s0] ss:$14 sps:$4 sm:$0xff]   ;;  %v1139_v36 = vld [vmem:[%s1513_s0 + $0x1c] ss:$14 sps:$4 sm:$0xff]   ;;  %v1141_v38 = vld [vmem:[%s1513_s0 + $0x38] ss:$14 sps:$4 sm:$0xff]   ;;  %v149_v48 = vrot.slane %v1143_v39, %v1358_v40 }
   0xe   :  { %1025 = vmatprep.subr.bf16.mxu1 %v1120_v14  ;;  %v1145_v41 = vld [vmem:[%s1514_s1 + $0x80] sm:$0xff]   ;;  %v64_v45 = vrot.slane %v1137_v35, %v1358_v40  ;;  %v78_v46 = vrot.slane %v1139_v36, %v1358_v40  ;;  %v135_v47 = vrot.slane %v1141_v38, %v1358_v40  ;;  %v1149_v49 = vld [vmem:[%s1513_s0 + $0x3c] ss:$14 sps:$4 sm:$0xff]   ;;  %v1153_v6 = vld [vmem:[%s1514_s1 + $0x130] sm:$0xff]  }
   0xf   :  { %1004 = vmatpush3.bf16.msra.mxu0 %v1119_v13  ;;  %v1147_v43 = vld [vmem:[%s1513_s0 + $0x4] ss:$14 sps:$4 sm:$0xff]   ;;  %v1148_v44 = vld [vmem:[%s1513_s0 + $0x20] ss:$14 sps:$4 sm:$0xff]   ;;  %v142_v59 = vrot.slane %v1149_v49, %v1358_v40  ;;  %v1158_v11 = vld [vmem:[%s1514_s1 + $0x158] sm:$0xff]  }
  0x10   :  { %1005 = vmatprep.subr.bf16.mxu0 %v1122_v16  ;;  %v1150_v50 = vld [vmem:[%s1513_s0 + $0x58] ss:$14 sps:$4 sm:$0xff]   ;;  %v71_v51 = vrot.slane %v1147_v43, %v1358_v40  ;;  %v85_v52 = vrot.slane %v1148_v44, %v1358_v40  ;;  %v87_v54 = vcombine.high %v64_v45, %v78_v46  ;;  %v158_v55 = vcombine.high %v135_v47, %v149_v48 }
  0x11   :  { %1026 = vmatpush3.bf16.msra.mxu1 %v1121_v15  ;;  %v86_v56 = vcombine.low %v64_v45, %v78_v46  ;;  %v157_v57 = vcombine.low %v135_v47, %v149_v48  ;;  %v156_v60 = vrot.slane %v1150_v50, %v1358_v40  ;;  %v1154_v7 = vld [vmem:[%s1514_s1 + $0x168] sm:$0xff]   ;;  %v1156_v9 = vld [vmem:[%s1514_s1 + $0x160] sm:$0xff]   ;;  %v1159_v13 = vld [vmem:[%s1514_s1 + $0x118] sm:$0xff]  }
  0x12   :  { %1027 = vmatprep.subr.bf16.mxu1 %v1124_v18  ;;  %v89_v58 = vcombine.high %v71_v51, %v85_v52  ;;  %v88_v61 = vcombine.low %v71_v51, %v85_v52  ;;  %v211_v62 = vpack.c.bf16 %v158_v55, %v87_v54  ;;  %v1155_v8 = vld [vmem:[%s1514_s1 + $0x128] sm:$0xff]   ;;  %v1157_v10 = vld [vmem:[%s1514_s1 + $0x120] sm:$0xff]   ;;  %v1160_v18 = vld [vmem:[%s1514_s1 + $0x150] sm:$0xff]  }
  0x13   :  { %1006 = vmatpush3.bf16.msra.mxu0 %v1123_v17  ;;  %v210_v63 = vpack.c.bf16 %v157_v57, %v86_v56  ;;  %v160_v1 = vcombine.high %v142_v59, %v156_v60  ;;  %v159_v2 = vcombine.low %v142_v59, %v156_v60  ;;  %v1166_v12 = vld [vmem:[%s1514_s1 + $0x180] sm:$0xff]   ;;  %v1167_v14 = vld [vmem:[%s1513_s0 + $0x8] ss:$14 sps:$4 sm:$0xff]   ;;  %v1169_v16 = vld [vmem:[%s1513_s0 + $0xc] ss:$14 sps:$4 sm:$0x33]  }
  0x14   :  { %1007 = vmatprep.subr.bf16.mxu0 %v1126_v20  ;;  %652 = vmatprep.mubr.bf16.mxu0 %v211_v62  ;;  %v1170_v15 = vld [vmem:[%s1513_s0 + $0x24] ss:$14 sps:$4 sm:$0xff]   ;;  %v1172_v17 = vld [vmem:[%s1513_s0 + $0x28] ss:$14 sps:$4 sm:$0x33]   ;;  %v1179_v45 = vld [vmem:[%s1516_s3 + $0x38] sm:$0xff]  }
  0x15   :  { %1028 = vmatpush3.bf16.msra.mxu1 %v1125_v19  ;;  %v213_v4 = vpack.c.bf16 %v160_v1, %v89_v58  ;;  %v212_v5 = vpack.c.bf16 %v159_v2, %v88_v61  ;;  %v100_v19 = vrot.slane %v1167_v14, %v1358_v40  ;;  %v114_v20 = vrot.slane %v1170_v15, %v1358_v40  ;;  %v1162_v28 = vld [vmem:[%s1514_s1 + $0x148] sm:$0xff]   ;;  %v1165_v43 = vld [vmem:[%s1514_s1 + $0x100] sm:$0xff]   ;;  %v1180_v46 = vld [vmem:[%s1516_s3 + $0x30] sm:$0xff]  }
  0x16   :  { %1029 = vmatprep.subr.bf16.mxu1 %v1128_v22  ;;  %v1175_v22 = vld [vmem:[%s1513_s0 + $0x44] ss:$14 sps:$4 sm:$0x33]   ;;  %v1163_v37 = vld [vmem:[%s1514_s1 + $0x108] sm:$0xff]   ;;  %v1183_v49 = vld [vmem:[%s1516_s3 + $0x18] sm:$0xff]  }
  0x17   :  { %1008 = vmatpush3.bf16.msra.mxu0 %v1127_v21  ;;  %693 = vmatprep.mubr.bf16.mxu1 %v213_v4  ;;  %v1173_v21 = vld [vmem:[%s1513_s0 + $0x40] ss:$14 sps:$4 sm:$0xff]  }
  0x18   :  { %1009 = vmatprep.subr.bf16.mxu0 %v1130_v24  ;;  %v107_v24 = vrot.slane %v1169_v16, %v1358_v40  ;;  %v1181_v47 = vld [vmem:[%s1516_s3 + $0x28] sm:$0xff]   ;;  %v1182_v48 = vld [vmem:[%s1516_s3 + $0x20] sm:$0xff]   ;;  %v1184_v50 = vld [vmem:[%s1516_s3 + $0x10] sm:$0xff]  }
  0x19   :  { %1030 = vmatpush3.bf16.msra.mxu1 %v1129_v23  ;;  %v1161_v23 = vld [vmem:[%s1514_s1 + $0x110] sm:$0xff]   ;;  %v1185_v51 = vld [vmem:[%s1516_s3 + $0x8] sm:$0xff]   ;;  %v1186_v52 = vld [vmem:[%s1516_s3] sm:$0xff]  }
  0x1a   :  { %1031 = vmatprep.subr.bf16.mxu1 %v1132_v26  ;;  %v1176_v26 = vld [vmem:[%s1513_s0 + $0x5c] ss:$14 sps:$4 sm:$0xff]  }
  0x1b   :  { %1010 = vmatpush3.bf16.msra.mxu0 %v1131_v25  ;;  %v121_v25 = vrot.slane %v1172_v17, %v1358_v40  ;;  %v185_v32 = vrot.slane %v1176_v26, %v1358_v40 }
  0x1c   :  { %1011 = vmatprep.subr.bf16.mxu0 %v1134_v29  ;;  %v171_v29 = vrot.slane %v1173_v21, %v1358_v40 }
  0x1d   :  { %1032 = vmatpush3.bf16.msra.mxu1 %v1133_v27  ;;  %v1178_v27 = vld [vmem:[%s1513_s0 + $0x60] ss:$14 sps:$4 sm:$0x33]   ;;  %v124_v34 = vcombine.low %v107_v24, %v121_v25 }
  0x1e   :  { %1033 = vmatprep.subr.bf16.mxu1 %v1136_v31  ;;  %v123_v31 = vcombine.high %v100_v19, %v114_v20  ;;  %v192_v33 = vrot.slane %v1178_v27, %v1358_v40  ;;  %v194_v35 = vcombine.high %v171_v29, %v185_v32 }
  0x1f   :  { %1012 = vmatpush3.bf16.msra.mxu0 %v1135_v30  ;;  %v178_v30 = vrot.slane %v1175_v22, %v1358_v40  ;;  %v122_v40 = vcombine.low %v100_v19, %v114_v20 }
  0x20   :  { %1041 = vmatprep.subr.bf16.mxu0 %v1146_v42  ;;  %v215_v38 = vpack.c.bf16 %v194_v35, %v123_v31  ;;  %v193_v42 = vcombine.low %v171_v29, %v185_v32 }
  0x21   :  { %1034 = vmatpush3.bf16.msra.mxu1 %v1145_v41  ;;  %v195_v36 = vcombine.low %v178_v30, %v192_v33  ;;  %v1164_v41 = vld [vmem:[%s1514_s1 + $0x140] sm:$0xff]  }
  0x22   :  { %1074 = vmatprep.subr.bf16.mxu1 %v1218_v53  ;;  %653 = vmatmul.mubr.bf16.vlgmr.msra.gmra.mxu0 %v210_v63  ;;  %v214_v44 = vpack.c.bf16 %v193_v42, %v122_v40 }
  0x23   :  { %1042 = vmatpush3.bf16.msra.mxu0 %v1151_v0  ;;  %v216_v39 = vpack.c.bf16 %v195_v36, %v124_v34  ;;  %734 = vmatprep.mubr.bf16.mxu0 %v215_v38 }
  0x24   :  { %1043 = vmatprep.subr.bf16.mxu0 %v1152_v3  ;;  %694 = vmatmul.mubr.bf16.vlgmr.msra.gmra.mxu1 %v212_v5 }
  0x25   :  { %1076 = vmatprep.mubr.msk.bf16.mxu1 %vm1219_vm0, %v1218_v53  ;;  %1075 = vmatpush3.bf16.msra.mxu1 %v1166_v12 }
  0x26   :  { %1080 = vmatprep.subr.bf16.mxu1 %v1218_v53 }
  0x27   :  { %1044 = vmatpush3.bf16.msra.mxu0 %v1153_v6 }
  0x28   :  { %1045 = vmatprep.subr.bf16.mxu0 %v1154_v7 }
  0x2b   :  { %1046 = vmatpush3.bf16.msra.mxu0 %v1155_v8 }
  0x2c   :  { %1047 = vmatprep.subr.bf16.mxu0 %v1156_v9  ;;  %1077 = vmatmul.mubr.msk.bf16.vlgmr.msra.gmra.mxu1 %vm616_vm1, %v216_v39 }
  0x2d   :  { %1096 = vmatprep.mubr.msk.bf16.mxu1 %vm1219_vm0, %v1218_v53  ;;  %1081 = vmatpush3.bf16.msra.mxu1 %v1179_v45 }
  0x2e   :  { %1082 = vmatprep.subr.bf16.mxu1 %v1218_v53 }
  0x2f   :  { %1048 = vmatpush3.bf16.msra.mxu0 %v1157_v10 }
  0x30   :  { %1049 = vmatprep.subr.bf16.mxu0 %v1158_v11 }
  0x31   :  { %1083 = vmatpush3.bf16.msra.mxu1 %v1180_v46 }
  0x32   :  { %1084 = vmatprep.subr.bf16.mxu1 %v1218_v53 }
  0x33   :  { %1050 = vmatpush3.bf16.msra.mxu0 %v1159_v13 }
  0x34   :  { %1051 = vmatprep.subr.bf16.mxu0 %v1160_v18 }
  0x35   :  { %1085 = vmatpush3.bf16.msra.mxu1 %v1181_v47 }
  0x36   :  { %1086 = vmatprep.subr.bf16.mxu1 %v1218_v53 }
  0x37   :  { %1052 = vmatpush3.bf16.msra.mxu0 %v1161_v23  ;;  %v988_v23 = vld [vmem:[%s1517_s4] ss:$0 sm:$0xff] }
  0x38   :  { %1053 = vmatprep.subr.bf16.mxu0 %v1162_v28 }
  0x39   :  { %1087 = vmatpush3.bf16.msra.mxu1 %v1182_v48 }
  0x3a   :  { %1088 = vmatprep.subr.bf16.mxu1 %v1218_v53 }
  0x3b   :  { %1054 = vmatpush3.bf16.msra.mxu0 %v1163_v37 }
  0x3c   :  { %1055 = vmatprep.subr.bf16.mxu0 %v1164_v41 }
  0x3d   :  { %1089 = vmatpush3.bf16.msra.mxu1 %v1183_v49 }
  0x3e   :  { %1090 = vmatprep.subr.bf16.mxu1 %v1218_v53 }
  0x3f   :  { %1056 = vmatpush3.bf16.msra.mxu0 %v1165_v43 }
  0x41   :  { %1091 = vmatpush3.bf16.msra.mxu1 %v1184_v50 }
  0x42   :  { %735 = vmatmul.mubr.bf16.vlgmr.msra.gmra.mxu0 %v214_v44  ;;  %1092 = vmatprep.subr.bf16.mxu1 %v1218_v53 }
  0x45   :  { %1093 = vmatpush3.bf16.msra.mxu1 %v1185_v51 }
  0x46   :  { %1094 = vmatprep.subr.bf16.mxu1 %v1218_v53  ;;  %v937_v53 = vld [vmem:[%s1515_s2] ss:$0 sm:$0xff] }
  0x49   :  { %1095 = vmatpush3.bf16.msra.mxu1 %v1186_v52 }
  0xe2   :  { %v1013_v56 = vpop.f32.mrf.mxu0 }
  0xe4   :  { %v1035_v54 = vpop.f32.mrf.mxu1  ;;  %v1014_v58 = vpop.f32.mrf.mxu0 }
  0xe5   :  { %v1015_v63 = vadd.f32 %v1014_v58, %v1013_v56 }
  0xe6   :  { %v1036_v55 = vpop.f32.mrf.mxu1  ;;  %v1016_v61 = vpop.f32.mrf.mxu0 }
  0xe7   :  { %v655_v3 = vadd.f32 %v1015_v63, %v937_v53  ;;  %v1037_v4 = vadd.f32 %v1036_v55, %v1035_v54 }
  0xe8   :  { %v1038_v57 = vpop.f32.mrf.mxu1  ;;  %v1017_v1 = vpop.f32.mrf.mxu0 }
  0xe9   :  { %v1018_v5 = vadd.f32 %v1017_v1, %v1016_v61  ;;  %v696_v8 = vadd.f32 %v1037_v4, %v655_v3 }
  0xea   :  { %v1039_v59 = vpop.f32.mrf.mxu1 }
  0xeb   :  { %v658_v9 = vadd.f32 %v1018_v5, %v937_v53  ;;  %v1040_v10 = vadd.f32 %v1039_v59, %v1038_v57 }
  0xec   :  { %v777_v60 = vpop.f32.mrf.mxu1 }
  0xed   :  { %v699_v15 = vadd.f32 %v1040_v10, %v658_v9 }
  0xee   :  { %v1078_v62 = vpop.f32.mrf.mxu1 }
  0xf0   :  { %v780_v0 = vpop.f32.mrf.mxu1 }
  0xf2   :  { %v1079_v2 = vpop.f32.mrf.mxu1 }
 0x102   :  { %v1057_v6 = vpop.f32.mrf.mxu0 }
 0x104   :  { %v1058_v7 = vpop.f32.mrf.mxu0 }
 0x105   :  { %v1059_v11 = vadd.f32 %v1058_v7, %v1057_v6 }
 0x106   :  { %v1060_v12 = vpop.f32.mrf.mxu0 }
 0x107   :  { %v737_v13 = vadd.f32 %v1059_v11, %v696_v8 }
 0x108   :  { %v1061_v14 = vpop.f32.mrf.mxu0 }
 0x109   :  { %v1062_v16 = vadd.f32 %v1061_v14, %v1060_v12  ;;  %v778_v17 = vadd.f32 %v777_v60, %v737_v13 }
 0x10b   :  { %v740_v18 = vadd.f32 %v1062_v16, %v699_v15  ;;  %v784_v20 = vmax.f32 %v778_v17, 0.0 }
 0x10d   :  { %v781_v19 = vadd.f32 %v780_v0, %v740_v18 }
 0x10f   :  { %v785_v21 = vmax.f32 %v781_v19, 0.0 }
 0x111   :  { %v786_v22 = vpack.c.bf16 %v785_v21, %v784_v20 }
 0x113   :  { %1097 = vmatmul.mubr.bf16.vlgmr.msra.gmra.mxu1 %v786_v22 }
 0x1d3   :  { %v892_v24 = vpop.f32.mrf.mxu1 }
 0x1d4   :  { %v893_v25 = vadd.f32 %v988_v23, %v892_v24 }
 0x1d5   :  { %v1098_v26 = vpop.f32.mrf.mxu1 }
 0x1d6   :  { %899 = vmax.xlane.f32.xlu0 %v893_v25 }
 0x1d7   :  { %v895_v27 = vpop.f32.mrf.mxu1 }
 0x1d8   :  { %v896_v28 = vadd.f32 %v988_v23, %v895_v27 }
 0x1d9   :  { %v1099_v29 = vpop.f32.mrf.mxu1 }
 0x1da   :  { %901 = vmax.xlane.f32.xlu0 %v896_v28 }
 0x25f   :  { %v900_v30 = vpop.xlane.xlu0 %899 }
 0x260   :  { %v903_v31 = vsub.f32 %v893_v25, %v900_v30 }
 0x262   :  { %v905_v32 = vmul.f32 1.442695, %v903_v31 }
 0x263   :  { %v902_v33 = vpop.xlane.xlu0 %901 }
 0x264   :  { %v904_v34 = vsub.f32 %v896_v28, %v902_v33  ;;  %1187 = vpow2.f32 %v905_v32 }
 0x266   :  { %v907_v35 = vmul.f32 1.442695, %v904_v34 }
 0x268   :  { %1189 = vpow2.f32 %v907_v35 }
 0x271   :  { %v1188_v36 = vpop.eup %1187 }
 0x272   :  { %909 = vadd.xlane.f32.xlu1 %v1188_v36 }
 0x275   :  { %v1190_v37 = vpop.eup %1189 }
 0x276   :  { %911 = vadd.xlane.f32.xlu1 %v1190_v37 }
 0x2fb   :  { %v910_v38 = vpop.xlane.xlu1 %909 }
 0x2fc   :  { %1191 = vlog2.f32 %v910_v38 }
 0x2ff   :  { %v912_v39 = vpop.xlane.xlu1 %911 }
 0x300   :  { %1193 = vlog2.f32 %v912_v39 }
 0x309   :  { %v1192_v41 = vpop.eup %1191 }
 0x30a   :  { %v914_v40 = vmul.f32 0.6931472, %v1192_v41 }
 0x30c   :  { %v917_v42 = vsub.f32 %v903_v31, %v914_v40 }
 0x30d   :  { %v1194_v43 = vpop.eup %1193 }
 0x30e   :  { %919 = vst [vmem:[#allocation2] sm:$0xff] %v917_v42  ;;  %v916_v44 = vmul.f32 0.6931472, %v1194_v43 }
 0x310   :  { %v918_v45 = vsub.f32 %v904_v34, %v916_v44 }
 0x312   :  { %920 = vst [vmem:[#allocation2 + $0x8] sm:$0xff] %v918_v45 }
 0x313   :  { %925 = vsyncadd [#allocation3], 224  ;;  %s1220_s4 = smov [#allocation2]  }
 0x314   :  { %s926_s14 = sshll.u32 %s1220_s4, 4  ;;  %s927_s14 = int_to_ptr.vmem [resolvable:$true] %s926_s14 }
 0x315   :  { %s1195_s15 = scalar_lea.vmem %s927_s14, 32  ;;  %s1199_s16 = scalar_lea.vmem %s927_s14, 256 }
 0x316   :  { %p1196_p0 = scmp.ne.s32.totalorder %s927_s14, %s1195_s15  ;;  %p1200_p1 = scmp.lt.s32.totalorder %s927_s14, %s927_s14 }
 0x317   :  { %p1201_p2 = scmp.lt.s32.totalorder %s1199_s16, %s1195_s15 }
 0x319   :  { %p1202_p3 = por %p1201_p2, %p1200_p1 }
 0x31b   :  { %p1203_p4 = pnand %p1202_p3, %p1196_p0 }
 0x31d   :  { %1206 = shalt.err (!%p1203_p4)
}
 0x31e   :  { %s1221_s0 = smov 32   ;;  %s1222_s17 = smov 2  }
 0x31f   :  { %932 = dma.vmem_to_hbm [thread:$0]  %s927_s14, 32, %s1518_s5, [#allocation3], %s1221_s0, %s1221_s0, %s1222_s17  }
 0x320   :  { %1215 = dma.done.wait [#allocation3], 256  }
 0x321   :  { %1216 = vsyncadd [#allocation3], 4294967040 }
 0x322   :  { %936 = vsyncpa [#allocation3], 1 }

</bundles_post_ra>
